<compile_context>
chip_gen: v6e
topology: v6e:2x2x1
jax: 0.10.0
libtpu: 0.0.40
codegen_flags: <defaults>
</compile_context>

<pallas_src>
import functools

import jax
import jax.numpy as jnp
from jax.experimental import pallas as pl
from jax.experimental.pallas import tpu as pltpu


def _bilinear_matrix(out_size, in_size, dtype=jnp.float32):
    """Dense (out_size, in_size) interpolation matrix for bilinear, align_corners=True."""
    if in_size == 1:
        return jnp.ones((out_size, 1), dtype)
    if out_size == 1:
        src = jnp.zeros((1,), jnp.float32)
    else:
        src = jnp.arange(out_size, dtype=jnp.float32) * (in_size - 1) / (out_size - 1)
    i0 = jnp.clip(jnp.floor(src).astype(jnp.int32), 0, in_size - 1)
    i1 = jnp.clip(i0 + 1, 0, in_size - 1)
    frac = src - i0.astype(jnp.float32)
    oh0 = jax.nn.one_hot(i0, in_size, dtype=dtype)
    oh1 = jax.nn.one_hot(i1, in_size, dtype=dtype)
    return (1.0 - frac)[:, None] * oh0 + frac[:, None] * oh1


def _block_diag(w, nb):
    """Block-diagonal stack of nb copies of (Co, Ci) -> (nb*Co, nb*Ci)."""
    co, ci = w.shape
    eye = jnp.eye(nb, dtype=w.dtype)
    return jnp.einsum('ab,oi->aobi', eye, w).reshape(nb * co, nb * ci)


def _pooling_upsample_kernel(x_ref, w1_ref, w2_ref, ksp_ref, b_ref, o_ref, *, img_w):
    # x_ref:   (R, HW)          R = nb*C rows, HW flat spatial on lanes
    # w1_ref:  (R, R)           block-diag of conv weight W[:, :C]
    # w2_ref:  (R, R)           block-diag of conv weight W[:, C:]
    # ksp_ref: (HW-W-1, HW)     sparse-row Kronecker bilinear upsample matrix
    # b_ref:   (R, 1)           bias (tiled per batch element in the block)
    # o_ref:   (R, HW)
    hw = x_ref.shape[-1]
    x = x_ref[...].astype(jnp.float32)

    # --- 2x2 max-pool via lane-shifted maxima; valid result at lanes 2*hp*W + 2*wp ---
    mh = jnp.maximum(x[:, : hw - img_w], x[:, img_w:])                 # rows h,h+1   (R, HW-W)
    mp = jnp.maximum(mh[:, : hw - img_w - 1], mh[:, 1: hw - img_w])    # cols w,w+1   (R, HW-W-1)

    # --- split-weight 1x1 conv; W2 branch mixed at pooled resolution, then Kron-upsampled ---
    o1 = jnp.dot(w1_ref[...], x, preferred_element_type=jnp.float32)   # (R, HW)
    y = jnp.dot(w2_ref[...], mp, preferred_element_type=jnp.float32)   # (R, HW-W-1)
    up = jnp.dot(y, ksp_ref[...], preferred_element_type=jnp.float32)  # (R, HW), zero rows kill
    #                                                                   # the garbage lanes of mp
    o_ref[...] = (o1 + up + b_ref[...]).astype(o_ref.dtype)


def _tpu_vmem_and_min_steps(n):
    vmem_cap = 64 << 20
    try:
        vmem_cap = int(pltpu.get_tpu_info().vmem_capacity_bytes)
    except Exception:
        pass
    kind = ""
    try:
        kind = jax.devices()[0].device_kind.lower()
    except Exception:
        pass
    multi_tc = any(t in kind for t in ("v4", "v5p", "v7"))
    min_steps = min(n, 4) if multi_tc else 1     # >= 2 steps per TensorCore when N allows
    return vmem_cap, min_steps


def _pick_batch_block(n, c, hw, itemsize, *, vmem_budget, min_steps):
    """Largest nb dividing N with (nb*C) sublane-aligned (or full-array) that fits the budget;
    only enforces multiple grid steps on multi-TensorCore chips (soft constraint)."""
    cands = [nb for nb in range(1, n + 1)
             if n % nb == 0 and ((nb * c) % 8 == 0 or nb == n)]

    def fits(nb):
        blk = nb * c * hw
        # double-buffered in + out blocks, ~6 f32-sized temporaries, constant operands
        need = 4 * blk * itemsize + 6 * blk * 4 + (hw * hw + 2 * (nb * c) ** 2) * 4
        return need <= vmem_budget

    ok = [nb for nb in cands if fits(nb)] or [min(cands)]
    for pred in (lambda nb: n // nb >= min_steps and nb * c <= 128,
                 lambda nb: nb * c <= 128,
                 lambda nb: n // nb >= min_steps,
                 lambda nb: True):
        sel = [nb for nb in ok if pred(nb)]
        if sel:
            return max(sel)
    return 1


def pooling_upsample(x_nchw, conv_w, conv_b):
    """x_nchw: (N, C, H, W); conv_w: (C, 2C, 1, 1); conv_b: (C,). Returns (N, C, H, W)."""
    N, C, H, W = x_nchw.shape
    if H % 2 or W % 2:
        # TODO(synk): odd H/W (PyTorch MaxPool2d(2) floor semantics) not implemented.
        raise ValueError("pooling_upsample kernel requires even H and W")
    Hp, Wp = H // 2, W // 2
    HW = H * W

    # Free view on contiguous NCHW; dtype passes through untouched.
    x = x_nchw.reshape(N * C, HW)

    vmem_cap, min_steps = _tpu_vmem_and_min_steps(N)
    nb = _pick_batch_block(N, C, HW, x.dtype.itemsize,
                           vmem_budget=vmem_cap // 2, min_steps=min_steps)
    R = nb * C
    grid = (N // nb,)

    # Stationary constant operands (same block every grid step -> fetched once).
    w = conv_w.reshape(C, 2 * C).astype(jnp.float32)
    w1bd = _block_diag(w[:, :C], nb)                                    # (R, R)
    w2bd = _block_diag(w[:, C:], nb)                                    # (R, R)
    bcol = jnp.tile(conv_b.astype(jnp.float32).reshape(C, 1), (nb, 1))  # (R, 1)

    ah = _bilinear_matrix(H, Hp)                                        # (H, Hp)
    aw = _bilinear_matrix(W, Wp)                                        # (W, Wp)
    kron = jnp.einsum('hp,wq->pqhw', ah, aw).reshape(Hp * Wp, HW)       # (Hp*Wp, HW)
    rows = HW - W - 1            # covers the max valid pooled lane 2*(Hp-1)*W + 2*(Wp-1)
    src = (2 * jnp.arange(Hp)[:, None] * W + 2 * jnp.arange(Wp)[None, :]).reshape(-1)
    ksp = jnp.zeros((rows, HW), jnp.float32).at[src].set(kron)          # sparse-row Kron matrix

    blk = R * HW
    footprint = (4 * blk * x.dtype.itemsize + 6 * blk * 4
                 + (rows * HW + 2 * R * R + R) * 4)
    vmem_limit = int(min(vmem_cap * 3 // 4, max(32 << 20, 2 * footprint)))

    kernel = functools.partial(_pooling_upsample_kernel, img_w=W)

    out = pl.pallas_call(
        kernel,
        out_shape=jax.ShapeDtypeStruct((N * C, HW), x.dtype),
        grid_spec=pltpu.PrefetchScalarGridSpec(
            num_scalar_prefetch=0,
            grid=grid,
            in_specs=[
                pl.BlockSpec((R, HW), lambda n: (n, 0)),
                pl.BlockSpec((R, R), lambda n: (0, 0)),
                pl.BlockSpec((R, R), lambda n: (0, 0)),
                pl.BlockSpec((rows, HW), lambda n: (0, 0)),
                pl.BlockSpec((R, 1), lambda n: (0, 0)),
            ],
            out_specs=pl.BlockSpec((R, HW), lambda n: (n, 0)),
        ),
        compiler_params=pltpu.CompilerParams(
            dimension_semantics=("parallel",),
            vmem_limit_bytes=vmem_limit,
        ),
    )(x, w1bd, w2bd, ksp, bcol)

    return out.reshape(N, C, H, W)


def _reference(x, conv_w, conv_b):
    """Pure-JAX reference matching PyTorch semantics (NCHW)."""
    N, C, H, W = x.shape
    Hp, Wp = H // 2, W // 2
    xp = x.reshape(N, C, Hp, 2, Wp, 2).max(axis=(3, 5))
    src_h = jnp.arange(H, dtype=jnp.float32) * (Hp - 1) / (H - 1)
    src_w = jnp.arange(W, dtype=jnp.float32) * (Wp - 1) / (W - 1)
    h0 = jnp.clip(jnp.floor(src_h).astype(jnp.int32), 0, Hp - 1)
    h1 = jnp.minimum(h0 + 1, Hp - 1)
    w0 = jnp.clip(jnp.floor(src_w).astype(jnp.int32), 0, Wp - 1)
    w1 = jnp.minimum(w0 + 1, Wp - 1)
    fh = (src_h - h0)[:, None]
    fw = (src_w - w0)[None, :]
    v00 = xp[:, :, h0][:, :, :, w0]
    v01 = xp[:, :, h0][:, :, :, w1]
    v10 = xp[:, :, h1][:, :, :, w0]
    v11 = xp[:, :, h1][:, :, :, w1]
    up = ((1 - fh) * (1 - fw) * v00 + (1 - fh) * fw * v01
          + fh * (1 - fw) * v10 + fh * fw * v11)
    cat = jnp.concatenate([x, up], axis=1)
    return (jnp.einsum('nihw,oi->nohw', cat, conv_w.reshape(C, 2 * C))
            + conv_b[None, :, None, None])


if __name__ == "__main__":
    key = jax.random.PRNGKey(0)
    k1, k2, k3 = jax.random.split(key, 3)

    N, C, H, W = 2, 4, 16, 16
    x = jax.random.normal(k1, (N, C, H, W), jnp.float32)
    # Deterministic synthetic conv params (shapes from nn.Conv2d(2C, C, 1)).
    conv_w = jax.random.normal(k2, (C, 2 * C, 1, 1), jnp.float32) * 0.1
    conv_b = jax.random.normal(k3, (C,), jnp.float32) * 0.1

    out = jax.block_until_ready(pooling_upsample(x, conv_w, conv_b))
    ref = _reference(x, conv_w, conv_b)

    assert out.shape == (N, C, H, W), out.shape
    assert out.dtype == x.dtype, out.dtype
    err = float(jnp.max(jnp.abs(out - ref)))
    assert jnp.allclose(out, ref, atol=2e-4, rtol=2e-4), err
    print("KERNEL_OK")
</pallas_src>

<mosaic_0001>
module attributes {stable_mosaic.version = 11 : i64} {
  func.func @_pooling_upsample_kernel(%arg0: i32, %arg1: memref<8x256xf32, #tpu.memory_space<vmem>>, %arg2: memref<8x8xf32, #tpu.memory_space<vmem>>, %arg3: memref<8x8xf32, #tpu.memory_space<vmem>>, %arg4: memref<239x256xf32, #tpu.memory_space<vmem>>, %arg5: memref<8x1xf32, #tpu.memory_space<vmem>>, %arg6: memref<8x256xf32, #tpu.memory_space<vmem>>) attributes {dimension_semantics = [#tpu.dimension_semantics<parallel>], iteration_bounds = array<i64: 1>, scalar_prefetch = 0 : i64, scratch_operands = 0 : i64, tpu.core_type = #tpu.core_type<tc>, window_params = [{transform_indices = @transform_0, window_bounds = array<i64: 8, 256>}, {pipeline_mode = #tpu.pipeline_mode<synchronous>, transform_indices = @transform_1, window_bounds = array<i64: 8, 8>}, {pipeline_mode = #tpu.pipeline_mode<synchronous>, transform_indices = @transform_2, window_bounds = array<i64: 8, 8>}, {pipeline_mode = #tpu.pipeline_mode<synchronous>, transform_indices = @transform_3, window_bounds = array<i64: 239, 256>}, {pipeline_mode = #tpu.pipeline_mode<synchronous>, transform_indices = @transform_4, window_bounds = array<i64: 8, 1>}, {transform_indices = @transform_5, window_bounds = array<i64: 8, 256>}]} {
    %c0 = arith.constant 0 : index
    %c0_0 = arith.constant 0 : index
    %0 = vector.load %arg1[%c0, %c0_0] : memref<8x256xf32, #tpu.memory_space<vmem>>, vector<8x256xf32>
    %1 = vector.extract_strided_slice %0 {offsets = [0, 0], sizes = [8, 240], strides = [1, 1]} : vector<8x256xf32> to vector<8x240xf32>
    %2 = vector.extract_strided_slice %0 {offsets = [0, 16], sizes = [8, 240], strides = [1, 1]} : vector<8x256xf32> to vector<8x240xf32>
    %3 = arith.maximumf %1, %2 : vector<8x240xf32>
    %4 = vector.extract_strided_slice %3 {offsets = [0, 0], sizes = [8, 239], strides = [1, 1]} : vector<8x240xf32> to vector<8x239xf32>
    %5 = vector.extract_strided_slice %3 {offsets = [0, 1], sizes = [8, 239], strides = [1, 1]} : vector<8x240xf32> to vector<8x239xf32>
    %6 = arith.maximumf %4, %5 : vector<8x239xf32>
    %c0_1 = arith.constant 0 : index
    %c0_2 = arith.constant 0 : index
    %7 = vector.load %arg2[%c0_1, %c0_2] : memref<8x8xf32, #tpu.memory_space<vmem>>, vector<8x8xf32>
    %cst = arith.constant dense<0.000000e+00> : vector<8x256xf32>
    %8 = tpu.matmul %7, %0, %cst {dimension_numbers = #tpu.dot_dimension_numbers<[1], [0], [0], [1], [0, 0, 1, 1], [], []>} : vector<8x8xf32>, vector<8x256xf32>, vector<8x256xf32> -> vector<8x256xf32>
    %c0_3 = arith.constant 0 : index
    %c0_4 = arith.constant 0 : index
    %9 = vector.load %arg3[%c0_3, %c0_4] : memref<8x8xf32, #tpu.memory_space<vmem>>, vector<8x8xf32>
    %cst_5 = arith.constant dense<0.000000e+00> : vector<8x239xf32>
    %10 = tpu.matmul %9, %6, %cst_5 {dimension_numbers = #tpu.dot_dimension_numbers<[1], [0], [0], [1], [0, 0, 1, 1], [], []>} : vector<8x8xf32>, vector<8x239xf32>, vector<8x239xf32> -> vector<8x239xf32>
    %c0_6 = arith.constant 0 : index
    %c0_7 = arith.constant 0 : index
    %11 = vector.load %arg4[%c0_6, %c0_7] : memref<239x256xf32, #tpu.memory_space<vmem>>, vector<239x256xf32>
    %cst_8 = arith.constant dense<0.000000e+00> : vector<8x256xf32>
    %12 = tpu.matmul %10, %11, %cst_8 {dimension_numbers = #tpu.dot_dimension_numbers<[1], [0], [0], [1], [0, 0, 1, 1], [], []>} : vector<8x239xf32>, vector<239x256xf32>, vector<8x256xf32> -> vector<8x256xf32>
    %13 = arith.addf %8, %12 : vector<8x256xf32>
    %c0_9 = arith.constant 0 : index
    %c0_10 = arith.constant 0 : index
    %14 = vector.load %arg5[%c0_9, %c0_10] : memref<8x1xf32, #tpu.memory_space<vmem>>, vector<8x1xf32>
    %15 = vector.broadcast %14 : vector<8x1xf32> to vector<8x256xf32>
    %16 = arith.addf %13, %15 : vector<8x256xf32>
    %c0_11 = arith.constant 0 : index
    %c0_12 = arith.constant 0 : index
    %17 = vector.load %arg6[%c0_11, %c0_12] : memref<8x256xf32, #tpu.memory_space<vmem>>, vector<8x256xf32>
    tpu.vector_store %arg6[%c0_11, %c0_12], %16 {strides = array<i32>} : memref<8x256xf32, #tpu.memory_space<vmem>>, vector<8x256xf32>,
    return
  }
  func.func @transform_0(%arg0: i32) -> (i32, i32) {
    %c0_i32 = arith.constant 0 : i32
    %c0_i32_0 = arith.constant 0 : i32
    return %arg0, %c0_i32 : i32, i32
  }
  func.func @transform_1(%arg0: i32) -> (i32, i32) {
    %c0_i32 = arith.constant 0 : i32
    %c0_i32_0 = arith.constant 0 : i32
    %c0_i32_1 = arith.constant 0 : i32
    return %c0_i32, %c0_i32_0 : i32, i32
  }
  func.func @transform_2(%arg0: i32) -> (i32, i32) {
    %c0_i32 = arith.constant 0 : i32
    %c0_i32_0 = arith.constant 0 : i32
    %c0_i32_1 = arith.constant 0 : i32
    return %c0_i32, %c0_i32_0 : i32, i32
  }
  func.func @transform_3(%arg0: i32) -> (i32, i32) {
    %c0_i32 = arith.constant 0 : i32
    %c0_i32_0 = arith.constant 0 : i32
    %c0_i32_1 = arith.constant 0 : i32
    return %c0_i32, %c0_i32_0 : i32, i32
  }
  func.func @transform_4(%arg0: i32) -> (i32, i32) {
    %c0_i32 = arith.constant 0 : i32
    %c0_i32_0 = arith.constant 0 : i32
    %c0_i32_1 = arith.constant 0 : i32
    return %c0_i32, %c0_i32_0 : i32, i32
  }
  func.func @transform_5(%arg0: i32) -> (i32, i32) {
    %c0_i32 = arith.constant 0 : i32
    %c0_i32_0 = arith.constant 0 : i32
    return %arg0, %c0_i32 : i32, i32
  }
}

</mosaic_0001>

<bundles_post_ra>
// kernel: tpu_custom_call.1
= control target key start
LH: loop header
LB: loop body
LE: loop exit
PB: predicated region body
PF: predicated region fallthrough
CT: control target
= control target key end

     0   :  { %10 = vsyncpa [#allocation3], 0  ;;  %s583_s0 = inlined_call_operand.hbm [shape: f32[8,256], index: 0, kind: input, shape index: {}]   ;;  %s584_s1 = inlined_call_operand.vmem [shape: f32[8,8], index: 1, kind: input, shape index: {}]   ;;  %s585_s2 = inlined_call_operand.hbm [shape: f32[8,8], index: 2, kind: input, shape index: {}]   ;;  %s586_s3 = inlined_call_operand.hbm [shape: f32[239,256], index: 3, kind: input, shape index: {}]   ;;  %s587_s4 = inlined_call_operand.vmem [shape: f32[8,1], index: 4, kind: input, shape index: {}]   ;;  %s588_s5 = inlined_call_operand.hbm [shape: f32[8,256], index: 5, kind: output, shape index: {}]  }
   0x1   :  { %11 = vsyncpa [#allocation6], 0 }
   0x2   :  { %12 = vsyncpa [#allocation4], 0  ;;  %s505_s18 = smov [#allocation5]   ;;  %s506_s20 = smov [#allocation2]  }
   0x3   :  { %s31_s19 = sshll.u32 %s505_s18, 4  ;;  %s19_s21 = sshll.u32 %s506_s20, 4  ;;  %s32_s19 = int_to_ptr.vmem [resolvable:$true] %s31_s19  ;;  %s20_s21 = int_to_ptr.vmem [resolvable:$true] %s19_s21 }
   0x4   :  { %s427_s22 = scalar_lea.vmem %s32_s19, 128  ;;  %p432_p1 = scmp.lt.s32.totalorder %s32_s19, %s32_s19 }
   0x5   :  { %p428_p0 = scmp.ne.s32.totalorder %s32_s19, %s427_s22  ;;  %p433_p2 = scmp.lt.s32.totalorder %s427_s22, %s427_s22 }
   0x7   :  { %p434_p3 = por %p433_p2, %p432_p1 }
   0x9   :  { %p435_p4 = pnand %p434_p3, %p428_p0 }
   0xb   :  { %438 = shalt.err (!%p435_p4)
}
   0xc   :  { %34 = dma.hbm_to_vmem [thread:$0]  %s585_s2, 128, %s32_s19, [#allocation6]  }
   0xd   :  { %s447_s25 = scalar_lea.vmem %s20_s21, 256  ;;  %p452_p6 = scmp.lt.s32.totalorder %s20_s21, %s20_s21 }
   0xe   :  { %p448_p5 = scmp.ne.s32.totalorder %s20_s21, %s447_s25  ;;  %p453_p7 = scmp.lt.s32.totalorder %s447_s25, %s447_s25 }
  0x10   :  { %p454_p8 = por %p453_p7, %p452_p6 }
  0x12   :  { %p455_p9 = pnand %p454_p8, %p448_p5 }
  0x14   :  { %458 = shalt.err (!%p455_p9)
}
  0x15   :  { %22 = dma.hbm_to_vmem [thread:$0]  %s583_s0, 256, %s20_s21, [#allocation3]  }
  0x16   :  { %s507_s28 = smov [#allocation7]  }
  0x17   :  { %s40_s29 = sshll.u32 %s507_s28, 4  ;;  %s41_s29 = int_to_ptr.vmem [resolvable:$true] %s40_s29 }
  0x18   :  { %s467_s30 = scalar_lea.vmem %s41_s29, 7680  ;;  %p472_p11 = scmp.lt.s32.totalorder %s41_s29, %s41_s29 }
  0x19   :  { %p468_p10 = scmp.ne.s32.totalorder %s41_s29, %s467_s30  ;;  %p473_p12 = scmp.lt.s32.totalorder %s467_s30, %s467_s30 }
  0x1b   :  { %p474_p13 = por %p473_p12, %p472_p11 }
  0x1d   :  { %p475_p0 = pnand %p474_p13, %p468_p10 }
  0x1f   :  { %478 = shalt.err (!%p475_p0)
}
  0x20   :  { %s508_s2 = smov 256   ;;  %s509_s6 = smov 16  }
  0x21   :  { %46 = dma.hbm_to_vmem [thread:$0]  %s586_s3, 7680, %s41_s29, [#allocation6], %s508_s2, %s508_s2, %s509_s6  }
  0x22   :  { %499 = dma.done.wait [#allocation3], 256  }
  0x23   :  { %500 = vsyncadd [#allocation3], 4294967040 }
  0x24   :  { %501 = dma.done.wait [#allocation6], 7808  }
  0x25   :  { %502 = vsyncadd [#allocation6], 4294959488  ;;  %v554_v0 = vld [vmem:[#allocation2] sm:$0xff]  ;;  %s510_s0 = smov 112   ;;  %v557_v1 = vld [vmem:[#allocation2 + $0x8] sm:$0xff]  ;;  %vm66_vm0 = vcmask 916480  }
  0x26   :  { %62 = vrot.lane.b32.xlu0 %v554_v0, %s510_s0  ;;  %v511_v3 = vmov 0.0   ;;  %v192_v4 = vld [vmem:[#allocation7 + $0xf8] sm:$0xff]  ;;  %v191_v5 = vld [vmem:[#allocation7 + $0xf0] sm:$0xff]  ;;  %v190_v6 = vld [vmem:[#allocation7 + $0xe8] sm:$0xff]  ;;  %s512_s3 = smov 127   ;;  %vm225_vm1 = vcmask 1046528  }
  0x27   :  { %154 = vmatprep.mubr.f32.mxu0 %v511_v3  ;;  %232 = vmatprep.subr.mxu1 %v192_v4  ;;  %v189_v8 = vld [vmem:[#allocation7 + $0xe0] sm:$0xff]  ;;  %v188_v10 = vld [vmem:[#allocation7 + $0xd8] sm:$0xff]  ;;  %v187_v12 = vld [vmem:[#allocation7 + $0xd0] sm:$0xff]  ;;  %vm78_vm2 = vcmask 1039360   ;;  %vm86_vm3 = vcmask 64512   ;;  %vm221_vm4 = vcmask 908288  }
  0x28   :  { %233 = vmatpush1.msra.mxu1 %v191_v5  ;;  %v186_v13 = vld [vmem:[#allocation7 + $0xc8] sm:$0xff]  ;;  %v185_v14 = vld [vmem:[#allocation7 + $0xc0] sm:$0xff]  ;;  %v184_v15 = vld [vmem:[#allocation7 + $0xb8] sm:$0xff] }
  0x29   :  { %234 = vmatprep.subr.mxu1 %v190_v6  ;;  %v183_v17 = vld [vmem:[#allocation7 + $0xb0] sm:$0xff]  ;;  %v182_v18 = vld [vmem:[#allocation7 + $0xa8] sm:$0xff]  ;;  %v181_v19 = vld [vmem:[#allocation7 + $0xa0] sm:$0xff] }
  0x2a   :  { %64 = vrot.lane.b32.xlu0 %v557_v1, %s510_s0  ;;  %235 = vmatpush1.msra.mxu1 %v189_v8  ;;  %v180_v20 = vld [vmem:[#allocation7 + $0x98] sm:$0xff]  ;;  %v179_v21 = vld [vmem:[#allocation7 + $0x90] sm:$0xff]  ;;  %v178_v22 = vld [vmem:[#allocation7 + $0x88] sm:$0xff] }
  0x2b   :  { %236 = vmatprep.subr.mxu1 %v188_v10  ;;  %v177_v23 = vld [vmem:[#allocation7 + $0x80] sm:$0xff]  ;;  %v176_v24 = vld [vmem:[#allocation7 + $0x78] sm:$0xff]  ;;  %v175_v25 = vld [vmem:[#allocation7 + $0x70] sm:$0xff] }
  0x2c   :  { %237 = vmatpush1.msra.mxu1 %v187_v12  ;;  %v174_v26 = vld [vmem:[#allocation7 + $0x68] sm:$0xff]  ;;  %v173_v27 = vld [vmem:[#allocation7 + $0x60] sm:$0xff]  ;;  %v172_v28 = vld [vmem:[#allocation7 + $0x58] sm:$0xff] }
  0x2d   :  { %238 = vmatprep.subr.mxu1 %v186_v13  ;;  %v171_v29 = vld [vmem:[#allocation7 + $0x50] sm:$0xff]  ;;  %v170_v30 = vld [vmem:[#allocation7 + $0x48] sm:$0xff]  ;;  %v169_v31 = vld [vmem:[#allocation7 + $0x40] sm:$0xff] }
  0x2e   :  { %239 = vmatpush1.msra.mxu1 %v185_v14  ;;  %v168_v32 = vld [vmem:[#allocation7 + $0x38] sm:$0xff]  ;;  %v167_v33 = vld [vmem:[#allocation7 + $0x30] sm:$0xff]  ;;  %v166_v34 = vld [vmem:[#allocation7 + $0x28] sm:$0xff] }
  0x2f   :  { %240 = vmatprep.subr.mxu1 %v184_v15  ;;  %v165_v35 = vld [vmem:[#allocation7 + $0x20] sm:$0xff]  ;;  %v164_v36 = vld [vmem:[#allocation7 + $0x18] sm:$0xff]  ;;  %v163_v37 = vld [vmem:[#allocation7 + $0x10] sm:$0xff] }
  0x30   :  { %241 = vmatpush1.msra.mxu1 %v183_v17  ;;  %v162_v38 = vld [vmem:[#allocation7 + $0x8] sm:$0xff]  ;;  %v161_v39 = vld [vmem:[#allocation7] sm:$0xff]  ;;  %v220_v40 = vld [vmem:[#allocation7 + $0x1d8] sm:$0x7f] }
  0x31   :  { %242 = vmatprep.subr.mxu1 %v182_v18  ;;  %v219_v41 = vld [vmem:[#allocation7 + $0x1d0] sm:$0x7f]  ;;  %v218_v42 = vld [vmem:[#allocation7 + $0x1c8] sm:$0xff]  ;;  %v217_v43 = vld [vmem:[#allocation7 + $0x1c0] sm:$0xff] }
  0x32   :  { %243 = vmatpush1.msra.mxu1 %v181_v19  ;;  %v216_v44 = vld [vmem:[#allocation7 + $0x1b8] sm:$0xff]  ;;  %v215_v45 = vld [vmem:[#allocation7 + $0x1b0] sm:$0xff]  ;;  %v214_v46 = vld [vmem:[#allocation7 + $0x1a8] sm:$0xff] }
  0x33   :  { %244 = vmatprep.subr.mxu1 %v180_v20  ;;  %v213_v47 = vld [vmem:[#allocation7 + $0x1a0] sm:$0xff]  ;;  %v212_v48 = vld [vmem:[#allocation7 + $0x198] sm:$0xff]  ;;  %v211_v49 = vld [vmem:[#allocation7 + $0x190] sm:$0xff] }
  0x34   :  { %245 = vmatpush1.msra.mxu1 %v179_v21  ;;  %v210_v50 = vld [vmem:[#allocation7 + $0x188] sm:$0xff]  ;;  %v209_v51 = vld [vmem:[#allocation7 + $0x180] sm:$0xff]  ;;  %v208_v52 = vld [vmem:[#allocation7 + $0x178] sm:$0xff] }
  0x35   :  { %246 = vmatprep.subr.mxu1 %v178_v22  ;;  %v207_v53 = vld [vmem:[#allocation7 + $0x170] sm:$0xff]  ;;  %v206_v54 = vld [vmem:[#allocation7 + $0x168] sm:$0xff]  ;;  %v205_v55 = vld [vmem:[#allocation7 + $0x160] sm:$0xff] }
  0x36   :  { %247 = vmatpush1.msra.mxu1 %v177_v23  ;;  %v204_v56 = vld [vmem:[#allocation7 + $0x158] sm:$0xff]  ;;  %v203_v57 = vld [vmem:[#allocation7 + $0x150] sm:$0xff]  ;;  %v202_v58 = vld [vmem:[#allocation7 + $0x148] sm:$0xff] }
  0x37   :  { %248 = vmatprep.subr.mxu1 %v176_v24  ;;  %v201_v59 = vld [vmem:[#allocation7 + $0x140] sm:$0xff]  ;;  %v200_v60 = vld [vmem:[#allocation7 + $0x138] sm:$0xff]  ;;  %v199_v61 = vld [vmem:[#allocation7 + $0x130] sm:$0xff] }
  0x38   :  { %249 = vmatpush1.msra.mxu1 %v175_v25  ;;  %v198_v62 = vld [vmem:[#allocation7 + $0x128] sm:$0xff]  ;;  %v197_v63 = vld [vmem:[#allocation7 + $0x120] sm:$0xff]  ;;  %v85_v8 = vld [vmem:[#allocation5] sm:$0xff] }
  0x39   :  { %250 = vmatprep.subr.mxu1 %v174_v26  ;;  %v195_v10 = vld [vmem:[#allocation7 + $0x110] sm:$0xff]  ;;  %v194_v12 = vld [vmem:[#allocation7 + $0x108] sm:$0xff]  ;;  %v193_v13 = vld [vmem:[#allocation7 + $0x100] sm:$0xff] }
  0x3a   :  { %251 = vmatpush1.msra.mxu1 %v173_v27 }
  0x3b   :  { %252 = vmatprep.subr.mxu1 %v172_v28 }
  0x3c   :  { %253 = vmatpush1.msra.mxu1 %v171_v29 }
  0x3d   :  { %254 = vmatprep.subr.mxu1 %v170_v30 }
  0x3e   :  { %255 = vmatpush1.msra.mxu1 %v169_v31 }
  0x3f   :  { %256 = vmatprep.subr.mxu1 %v168_v32 }
  0x40   :  { %257 = vmatpush1.msra.mxu1 %v167_v33 }
  0x41   :  { %258 = vmatprep.subr.mxu1 %v166_v34 }
  0x42   :  { %259 = vmatpush1.msra.mxu1 %v165_v35 }
  0x43   :  { %260 = vmatprep.subr.mxu1 %v164_v36 }
  0x44   :  { %261 = vmatpush1.msra.mxu1 %v163_v37 }
  0x45   :  { %262 = vmatprep.subr.mxu1 %v162_v38 }
  0x46   :  { %263 = vmatpush1.msra.mxu1 %v161_v39 }
  0x47   :  { %404 = vmatprep.subr.msk.mxu1 %vm225_vm1, %v220_v40 }
  0x48   :  { %405 = vmatpush2.msk.msra.mxu1 %vm225_vm1, %v219_v41 }
  0x49   :  { %270 = vmatprep.subr.mxu1 %v218_v42 }
  0x4a   :  { %271 = vmatpush2.msra.mxu1 %v217_v43 }
  0x4b   :  { %272 = vmatprep.subr.mxu1 %v216_v44 }
  0x4c   :  { %273 = vmatpush2.msra.mxu1 %v215_v45 }
  0x4d   :  { %274 = vmatprep.subr.mxu1 %v214_v46 }
  0x4e   :  { %275 = vmatpush2.msra.mxu1 %v213_v47 }
  0x4f   :  { %276 = vmatprep.subr.mxu1 %v212_v48 }
  0x50   :  { %277 = vmatpush2.msra.mxu1 %v211_v49 }
  0x51   :  { %278 = vmatprep.subr.mxu1 %v210_v50 }
  0x52   :  { %279 = vmatpush2.msra.mxu1 %v209_v51 }
  0x53   :  { %280 = vmatprep.subr.mxu1 %v208_v52 }
  0x54   :  { %281 = vmatpush2.msra.mxu1 %v207_v53 }
  0x55   :  { %282 = vmatprep.subr.mxu1 %v206_v54 }
  0x56   :  { %283 = vmatpush2.msra.mxu1 %v205_v55 }
  0x57   :  { %284 = vmatprep.subr.mxu1 %v204_v56 }
  0x58   :  { %285 = vmatpush2.msra.mxu1 %v203_v57 }
  0x59   :  { %286 = vmatprep.subr.mxu1 %v202_v58 }
  0x5a   :  { %287 = vmatpush2.msra.mxu1 %v201_v59 }
  0x5b   :  { %288 = vmatprep.subr.mxu1 %v200_v60 }
  0x5c   :  { %289 = vmatpush2.msra.mxu1 %v199_v61 }
  0x5d   :  { %290 = vmatprep.subr.mxu1 %v198_v62 }
  0x5e   :  { %291 = vmatpush2.msra.mxu1 %v197_v63 }
  0x98   :  { %v63_v2 = vpop.permute.xlu0 %62 }
  0x9c   :  { %v65_v7 = vpop.permute.xlu0 %64 }
  0x9d   :  { %v67_v9 = vsel %vm66_vm0, %v63_v2, %v65_v7  ;;  %v566_v16 = vmax.f32 %v557_v1, %v65_v7 }
  0x9e   :  { %v562_v11 = vmax.f32 %v554_v0, %v67_v9  ;;  %v196_v9 = vld [vmem:[#allocation7 + $0x118] sm:$0xff] }
  0x9f   :  { %292 = vmatprep.subr.mxu1 %v196_v9 }
  0xa0   :  { %74 = vrot.lane.b32.xlu1 %v562_v11, %s512_s3  ;;  %293 = vmatpush2.msra.mxu1 %v195_v10 }
  0xa1   :  { %294 = vmatprep.subr.mxu1 %v194_v12 }
  0xa2   :  { %295 = vmatpush2.msra.mxu1 %v193_v13 }
  0xa4   :  { %76 = vrot.lane.b32.xlu1 %v566_v16, %s512_s3 }
 0x112   :  { %v75_v2 = vpop.permute.xlu1 %74 }
 0x116   :  { %v77_v4 = vpop.permute.xlu1 %76 }
 0x117   :  { %v79_v5 = vsel %vm78_vm2, %v75_v2, %v77_v4  ;;  %v83_v6 = vmax.f32 %v566_v16, %v77_v4 }
 0x118   :  { %v82_v7 = vmax.f32 %v562_v11, %v79_v5  ;;  %v84_v11 = vld [vmem:[%s584_s1] sm:$0xff]  ;;  %s514_s1 = smov [#allocation8]  }
 0x119   :  { %120 = vmatprep.subr.mxu0 %v83_v6  ;;  %s393_s13 = sshll.u32 %s514_s1, 4  ;;  %s394_s13 = int_to_ptr.vmem [resolvable:$true] %s393_s13 }
 0x11a   :  { %121 = vmatpush1.msra.mxu0 %v82_v7  ;;  %p484_p2 = scmp.lt.s32.totalorder %s394_s13, %s394_s13 }
 0x11b   :  { %403 = vmatmul.mubr.msk.f32.vlgmr.msra.gmra.mxu0 %vm86_vm3, %v85_v8  ;;  %336 = vmatprep.subr.mxu0 %v557_v1  ;;  %v377_v1 = vld [vmem:[%s587_s4] sm:$0xff]  ;;  %s479_s4 = scalar_lea.vmem %s394_s13, 256 }
 0x11c   :  { %337 = vmatpush1.msra.mxu0 %v554_v0  ;;  %370 = vmatprep.mubr.f32.mxu0 %v511_v3  ;;  %v513_v0 = vmov 0   ;;  %p480_p1 = scmp.ne.s32.totalorder %s394_s13, %s479_s4  ;;  %p485_p3 = scmp.lt.s32.totalorder %s479_s4, %s479_s4 }
 0x11d   :  { %418 = vset.pattern.permute.xlu0 %v513_v0 }
 0x11e   :  { %380 = vperm.xlu0 %418, %v377_v1   ;;  %p486_p4 = por %p485_p3, %p484_p2 }
 0x11f   :  { %407 = vmatmul.mubr.msk.f32.vlgmr.msra.gmra.mxu0 %vm86_vm3, %v84_v11 }
 0x120   :  { %p487_p5 = pnand %p486_p4, %p480_p1 }
 0x199   :  { %v381_v17 = vpop.permute.xlu0 %380 }
 0x1db   :  { %v156_v3 = vpop.f32.mrf.mxu0 }
 0x1dd   :  { %v158_v14 = vpop.f32.mrf.mxu0 }
 0x1de   :  { %406 = vmatprep.mubr.msk.f32.mxu1 %vm221_vm4, %v158_v14 }
 0x1df   :  { %297 = vmatmul.mubr.f32.vlgmr.msra.gmra.mxu1 %v156_v3  ;;  %v372_v15 = vpop.f32.mrf.mxu0 }
 0x1e1   :  { %v374_v19 = vpop.f32.mrf.mxu0 }
 0x29f   :  { %v298_v16 = vpop.f32.mrf.mxu1 }
 0x2a0   :  { %v373_v18 = vadd.f32 %v372_v15, %v298_v16 }
 0x2a1   :  { %v300_v20 = vpop.f32.mrf.mxu1 }
 0x2a2   :  { %v375_v21 = vadd.f32 %v374_v19, %v300_v20  ;;  %v383_v22 = vadd.f32 %v381_v17, %v373_v18 }
 0x2a4   :  { %v384_v23 = vadd.f32 %v381_v17, %v375_v21  ;;  %385 = vst [vmem:[#allocation8] sm:$0xff] %v383_v22 }
 0x2a6   :  { %386 = vst [vmem:[#allocation8 + $0x8] sm:$0xff] %v384_v23 }
 0x2a7   :  { %490 = shalt.err (!%p487_p5)
}
 0x2a8   :  { %396 = dma.vmem_to_hbm [thread:$0]  %s394_s13, 256, %s588_s5, [#allocation4]  }
 0x2a9   :  { %503 = dma.done.wait [#allocation4], 256  }
 0x2aa   :  { %504 = vsyncadd [#allocation4], 4294967040 }
 0x2ab   :  { %400 = vsyncpa [#allocation3], 1 }
 0x2ac   :  { %401 = vsyncpa [#allocation6], 1 }
 0x2ad   :  { %402 = vsyncpa [#allocation4], 1 }

</bundles_post_ra>
